<compile_context>
chip_gen: v5e
topology: v5e:2x2
jax: 0.10.0
libtpu: 0.0.40
codegen_flags: <defaults>
</compile_context>

<pallas_src>
import math
from functools import partial

import jax
import jax.numpy as jnp
from jax import lax
from jax.experimental import pallas as pl
from jax.experimental.pallas import tpu as pltpu

NEG = -1e30                      # large negative used for masking (finite -inf)
VMEM_LIMIT = 64 * 1024 * 1024    # raises v5e 16MiB default, fits v7x 64MiB


def _tile(dim, pref, align):
    """Pick a tile size: the full dim if small, `pref` if it divides dim,
    otherwise the largest `align`-multiple divisor of dim <= pref.  Falls back
    to the full dim only when no aligned divisor exists (full dims are always
    legal block shapes)."""
    if dim <= pref:
        return dim
    if dim % pref == 0:
        return pref
    t = (pref // align) * align
    while t >= align:
        if dim % t == 0:
            return t
        t -= align
    return dim


# ----------------------------------------------------------------------------
# General tiled matmul (fp32 output accumulated in-place, optional fused bias)
# ----------------------------------------------------------------------------
def _matmul_kernel(x_ref, w_ref, o_ref):
    @pl.when(pl.program_id(2) == 0)
    def _():
        o_ref[...] = jnp.zeros_like(o_ref)
    o_ref[...] += jnp.dot(x_ref[...], w_ref[...],
                          preferred_element_type=jnp.float32)


def _matmul_bias_kernel(x_ref, w_ref, e_ref, o_ref):
    @pl.when(pl.program_id(2) == 0)
    def _():
        o_ref[...] = jnp.broadcast_to(e_ref[...], o_ref.shape).astype(o_ref.dtype)
    o_ref[...] += jnp.dot(x_ref[...], w_ref[...],
                          preferred_element_type=jnp.float32)


def pallas_matmul(x, w, extra=None, *, tm=256, tn=512, tk=512):
    """y = x @ w (+ extra).  fp32 output, accumulated directly into the output
    block (no fp32 scratch).  extra is a bias (N,)/(1,N) or residual (M,N)."""
    M, K = x.shape
    N = w.shape[1]
    tm = _tile(M, tm, 8)
    tn = _tile(N, tn, 128)
    tk = _tile(K, tk, 128)
    grid = (M // tm, N // tn, K // tk)

    in_specs = [
        pl.BlockSpec((tm, tk), lambda i, j, k: (i, k)),
        pl.BlockSpec((tk, tn), lambda i, j, k: (k, j)),
    ]
    args = [x, w]
    if extra is None:
        kernel = _matmul_kernel
    else:
        kernel = _matmul_bias_kernel
        e = extra.astype(jnp.float32)
        if e.ndim == 1:
            e = e.reshape(1, N)
        if e.shape[0] == 1:
            in_specs.append(pl.BlockSpec((1, tn), lambda i, j, k: (0, j)))
        else:
            in_specs.append(pl.BlockSpec((tm, tn), lambda i, j, k: (i, j)))
        args.append(e)

    return pl.pallas_call(
        kernel,
        out_shape=jax.ShapeDtypeStruct((M, N), jnp.float32),
        grid=grid,
        in_specs=in_specs,
        out_specs=pl.BlockSpec((tm, tn), lambda i, j, k: (i, j)),
        compiler_params=pltpu.CompilerParams(
            dimension_semantics=("parallel", "parallel", "arbitrary"),
            vmem_limit_bytes=VMEM_LIMIT),
    )(*args)


# ----------------------------------------------------------------------------
# Fused RMSNorm + matmul (final-norm + lm_head) with cached normed activations
# ----------------------------------------------------------------------------
def _rmsnorm_matmul_kernel(x_ref, g_ref, w_ref, o_ref, xn_ref, *, eps):
    @pl.when(pl.program_id(1) == 0)
    def _():
        x = x_ref[...].astype(jnp.float32)                    # (tm, D)
        var = jnp.mean(x * x, axis=-1, keepdims=True)
        xn_ref[...] = ((x * lax.rsqrt(var + eps)) * g_ref[...]).astype(jnp.bfloat16)

    o_ref[...] = jnp.dot(xn_ref[...], w_ref[...],
                         preferred_element_type=jnp.float32).astype(o_ref.dtype)


def fused_rmsnorm_matmul(x, gamma, w, *, out_dtype=jnp.float32, tm=256, tn=512):
    M, D = x.shape
    N = w.shape[1]
    tm = _tile(M, tm, 8)
    tn = _tile(N, tn, 128)
    return pl.pallas_call(
        partial(_rmsnorm_matmul_kernel, eps=1e-6),
        out_shape=jax.ShapeDtypeStruct((M, N), out_dtype),
        grid=(M // tm, N // tn),
        in_specs=[
            pl.BlockSpec((tm, D), lambda i, j: (i, 0)),
            pl.BlockSpec((1, D), lambda i, j: (0, 0)),
            pl.BlockSpec((D, tn), lambda i, j: (0, j)),
        ],
        out_specs=pl.BlockSpec((tm, tn), lambda i, j: (i, j)),
        scratch_shapes=[pltpu.VMEM((tm, D), jnp.bfloat16)],   # cached norm
        compiler_params=pltpu.CompilerParams(
            dimension_semantics=("parallel", "arbitrary"),
            vmem_limit_bytes=VMEM_LIMIT),
    )(x, gamma.reshape(1, D), w)


# ----------------------------------------------------------------------------
# Fused RMSNorm + per-head QKV projection + RoPE (head-major q/k/v outputs)
# ----------------------------------------------------------------------------
def _qkv_rope_kernel(x_ref, g_ref, w_ref, cos_ref, sin_ref,
                     q_ref, k_ref, v_ref, xn_scr, *, eps, scale):
    @pl.when(pl.program_id(2) == 0)                           # once per row tile
    def _():
        x = x_ref[...].astype(jnp.float32)                    # (tq, D)
        var = jnp.mean(x * x, axis=-1, keepdims=True)
        xn_scr[...] = ((x * lax.rsqrt(var + eps)) * g_ref[...]).astype(jnp.bfloat16)

    Dh = q_ref.shape[-1]
    half = Dh // 2
    qkv = jnp.dot(xn_scr[...], w_ref[...],
                  preferred_element_type=jnp.float32)         # (tq, 3*Dh)
    cos = cos_ref[...]
    sin = sin_ref[...]
    # rotate_half(x) == roll(x, Dh/2, lanes) * [-1]*half + [1]*half  (XLU slot)
    sign = jnp.where(lax.broadcasted_iota(jnp.int32, (1, Dh), 1) < half, -1.0, 1.0)
    q = qkv[:, :Dh]
    k = qkv[:, Dh:2 * Dh]
    v = qkv[:, 2 * Dh:]
    q = (q * cos + pltpu.roll(q, half, axis=1) * sign * sin) * scale
    k = k * cos + pltpu.roll(k, half, axis=1) * sign * sin
    q_ref[...] = q.astype(q_ref.dtype)
    k_ref[...] = k.astype(k_ref.dtype)
    v_ref[...] = v.astype(v_ref.dtype)


def fused_rmsnorm_qkv_rope(x, gamma, w_heads, cos, sin, *, tq=256):
    """x: (B,S,D) bf16; w_heads: (H, D, 3*Dh) bf16 (head-major, lane-aligned);
    cos/sin: (S, Dh) fp32.  Returns roped q (pre-scaled), k, v as (B,H,S,Dh) bf16."""
    B, S, D = x.shape
    H, _, threeDh = w_heads.shape
    Dh = threeDh // 3
    tq = _tile(S, tq, 8)
    scale = 1.0 / math.sqrt(Dh)
    out_spec = pl.BlockSpec((None, None, tq, Dh), lambda b, si, h: (b, h, si, 0))
    out_shape = jax.ShapeDtypeStruct((B, H, S, Dh), jnp.bfloat16)
    return pl.pallas_call(
        partial(_qkv_rope_kernel, eps=1e-6, scale=scale),
        out_shape=(out_shape, out_shape, out_shape),
        grid=(B, S // tq, H),
        in_specs=[
            pl.BlockSpec((None, tq, D), lambda b, si, h: (b, si, 0)),
            pl.BlockSpec((1, D), lambda b, si, h: (0, 0)),
            pl.BlockSpec((None, D, 3 * Dh), lambda b, si, h: (h, 0, 0)),
            pl.BlockSpec((tq, Dh), lambda b, si, h: (si, 0)),
            pl.BlockSpec((tq, Dh), lambda b, si, h: (si, 0)),
        ],
        out_specs=(out_spec, out_spec, out_spec),
        scratch_shapes=[pltpu.VMEM((tq, D), jnp.bfloat16)],   # cached norm
        compiler_params=pltpu.CompilerParams(
            dimension_semantics=("parallel", "parallel", "arbitrary"),
            vmem_limit_bytes=VMEM_LIMIT),
    )(x, gamma.reshape(1, D), w_heads, cos, sin)


# ----------------------------------------------------------------------------
# Flash attention (online softmax over KV tiles) fused with out-proj + residual
# ----------------------------------------------------------------------------
def _flash_attn_kernel(q_ref, k_ref, v_ref, mask_ref, wo_ref, res_ref, o_ref,
                       m_scr, l_scr, acc_scr, out_scr, *, causal, tq, tk):
    qi = pl.program_id(1)
    h = pl.program_id(2)
    ki = pl.program_id(3)
    n_kv = pl.num_programs(3)

    @pl.when(ki == 0)                                         # per-head reset
    def _():
        m_scr[...] = jnp.full_like(m_scr, NEG)
        l_scr[...] = jnp.zeros_like(l_scr)
        acc_scr[...] = jnp.zeros_like(acc_scr)

    @pl.when((ki == 0) & (h == 0))                            # per-row-tile reset
    def _():
        out_scr[...] = jnp.zeros_like(out_scr)

    # q is pre-roped and pre-scaled by 1/sqrt(Dh); k pre-roped.
    s = lax.dot_general(q_ref[...], k_ref[...], (((1,), (1,)), ((), ())),
                        preferred_element_type=jnp.float32)   # (tq, tk)
    s = s + jnp.where(mask_ref[...] > 0.0, 0.0, NEG)          # key padding mask
    if causal:
        row = qi * tq + lax.broadcasted_iota(jnp.int32, (tq, tk), 0)
        col = ki * tk + lax.broadcasted_iota(jnp.int32, (tq, tk), 1)
        s = jnp.where(row >= col, s, NEG)

    m_prev = m_scr[...]
    m_new = jnp.maximum(m_prev, jnp.max(s, axis=-1, keepdims=True))
    alpha = jnp.exp(m_prev - m_new)
    p = jnp.exp(s - m_new)
    l_scr[...] = alpha * l_scr[...] + jnp.sum(p, axis=-1, keepdims=True)
    acc_scr[...] = alpha * acc_scr[...] + jnp.dot(
        p.astype(jnp.bfloat16), v_ref[...], preferred_element_type=jnp.float32)
    m_scr[...] = m_new

    @pl.when(ki == n_kv - 1)                                  # finalize this head
    def _():
        inv = pl.reciprocal(l_scr[...], approx=True)
        head_out = (acc_scr[...] * inv).astype(jnp.bfloat16)  # (tq, Dh)
        out_scr[...] += jnp.dot(head_out, wo_ref[...],
                                preferred_element_type=jnp.float32)

    @pl.when((ki == n_kv - 1) & (h == pl.num_programs(2) - 1))
    def _():
        o_ref[...] = (out_scr[...] + res_ref[...].astype(jnp.float32)
                      ).astype(o_ref.dtype)


def pallas_flash_attention(q, k, v, mask_f, wo_heads, resid, causal,
                           *, tq=128, tk=128):
    """q,k,v: (B,H,S,Dh) bf16 (roped); mask_f: (B,1,S) fp32; wo_heads: (H,Dh,D)
    bf16; resid: (B,S,D) bf16.  Returns attn_out @ Wo + resid as (B,S,D) bf16."""
    B, H, S, Dh = q.shape
    D = H * Dh
    tq = _tile(S, tq, 8)
    tk = _tile(S, tk, 128)
    kv_spec = pl.BlockSpec((None, None, tk, Dh), lambda b, qi, h, ki: (b, h, ki, 0))
    return pl.pallas_call(
        partial(_flash_attn_kernel, causal=causal, tq=tq, tk=tk),
        out_shape=jax.ShapeDtypeStruct((B, S, D), jnp.bfloat16),
        grid=(B, S // tq, H, S // tk),
        in_specs=[
            pl.BlockSpec((None, None, tq, Dh), lambda b, qi, h, ki: (b, h, qi, 0)),
            kv_spec,
            kv_spec,
            pl.BlockSpec((None, 1, tk), lambda b, qi, h, ki: (b, 0, ki)),
            pl.BlockSpec((None, Dh, D), lambda b, qi, h, ki: (h, 0, 0)),
            pl.BlockSpec((None, tq, D), lambda b, qi, h, ki: (b, qi, 0)),
        ],
        out_specs=pl.BlockSpec((None, tq, D), lambda b, qi, h, ki: (b, qi, 0)),
        scratch_shapes=[
            pltpu.VMEM((tq, 1), jnp.float32),     # running max
            pltpu.VMEM((tq, 1), jnp.float32),     # running denom
            pltpu.VMEM((tq, Dh), jnp.float32),    # per-head PV accumulator
            pltpu.VMEM((tq, D), jnp.float32),     # out-projection accumulator
        ],
        compiler_params=pltpu.CompilerParams(
            dimension_semantics=("parallel", "parallel", "arbitrary", "arbitrary"),
            vmem_limit_bytes=VMEM_LIMIT),
    )(q, k, v, mask_f, wo_heads, resid)


# ----------------------------------------------------------------------------
# Fused RMSNorm + SwiGLU MLP + residual (hidden dim tiled + fp32 accumulation)
# ----------------------------------------------------------------------------
def _swiglu_kernel(x_ref, g_ref, wg_ref, wu_ref, wd_ref, o_ref,
                   acc_ref, xn_ref, *, eps):
    j = pl.program_id(1)

    @pl.when(j == 0)
    def _():
        x = x_ref[...].astype(jnp.float32)
        var = jnp.mean(x * x, axis=-1, keepdims=True)
        xn_ref[...] = ((x * lax.rsqrt(var + eps)) * g_ref[...]).astype(jnp.bfloat16)
        acc_ref[...] = jnp.zeros_like(acc_ref)

    xn = xn_ref[...]
    g = jnp.dot(xn, wg_ref[...], preferred_element_type=jnp.float32)
    u = jnp.dot(xn, wu_ref[...], preferred_element_type=jnp.float32)
    a = (g * jax.nn.sigmoid(g)) * u                           # SiLU(gate)*up fp32
    acc_ref[...] += jnp.dot(a.astype(jnp.bfloat16), wd_ref[...],
                            preferred_element_type=jnp.float32)

    @pl.when(j == pl.num_programs(1) - 1)
    def _():
        o_ref[...] = (x_ref[...].astype(jnp.float32) + acc_ref[...]
                      ).astype(o_ref.dtype)


def fused_rmsnorm_swiglu(x, gamma, wg, wu, wd, *, tm=256, tf=256):
    M, D = x.shape
    F = wg.shape[1]
    tm = _tile(M, tm, 8)
    tf = _tile(F, tf, 128)
    return pl.pallas_call(
        partial(_swiglu_kernel, eps=1e-6),
        out_shape=jax.ShapeDtypeStruct((M, D), jnp.bfloat16),
        grid=(M // tm, F // tf),
        in_specs=[
            pl.BlockSpec((tm, D), lambda i, j: (i, 0)),
            pl.BlockSpec((1, D), lambda i, j: (0, 0)),
            pl.BlockSpec((D, tf), lambda i, j: (0, j)),
            pl.BlockSpec((D, tf), lambda i, j: (0, j)),
            pl.BlockSpec((tf, D), lambda i, j: (j, 0)),
        ],
        out_specs=pl.BlockSpec((tm, D), lambda i, j: (i, 0)),
        scratch_shapes=[pltpu.VMEM((tm, D), jnp.float32),     # down-proj acc
                        pltpu.VMEM((tm, D), jnp.bfloat16)],   # cached norm
        compiler_params=pltpu.CompilerParams(
            dimension_semantics=("parallel", "arbitrary"),
            vmem_limit_bytes=VMEM_LIMIT),
    )(x, gamma.reshape(1, D), wg, wu, wd)


# ----------------------------------------------------------------------------
# Fused final-RMSNorm + VAE encode (pooling softmax along lanes + w_e proj)
# ----------------------------------------------------------------------------
def _vae_encode_kernel(h_ref, g_ref, mask_ref, fwt_ref, fb_ref, we_ref, be_ref,
                       o_ref, *, eps):
    h = h_ref[...].astype(jnp.float32)                        # (S, D)
    var = jnp.mean(h * h, axis=-1, keepdims=True)
    hn = (h * lax.rsqrt(var + eps)) * g_ref[...]
    # scores laid out along lanes: (1, S)
    scores = lax.dot_general(fwt_ref[...], hn, (((1,), (1,)), ((), ())),
                             preferred_element_type=jnp.float32)
    scores = scores + fb_ref[...] + jnp.where(mask_ref[...] > 0.0, 0.0, NEG)
    scores = scores - jnp.max(scores, axis=-1, keepdims=True)
    w = jnp.exp(scores)
    w = w * pl.reciprocal(jnp.sum(w, axis=-1, keepdims=True), approx=True)
    pooled = jnp.dot(w, hn, preferred_element_type=jnp.float32)      # (1, D)
    o_ref[...] = (jnp.dot(pooled, we_ref[...],
                          preferred_element_type=jnp.float32)
                  + be_ref[...]).astype(o_ref.dtype)


def vae_encode(params, h, attention_mask):
    """h: (B,S,D) pre-final-norm bf16 hidden states -> mean (B, z_dim) fp32."""
    B, S, D = h.shape
    vae = params["vae"]
    z_dim = vae["we"].shape[1]
    mask_f = attention_mask.astype(jnp.float32).reshape(B, 1, S)
    out = pl.pallas_call(
        partial(_vae_encode_kernel, eps=1e-6),
        out_shape=jax.ShapeDtypeStruct((B, 1, z_dim), jnp.float32),
        grid=(B,),
        in_specs=[
            pl.BlockSpec((None, S, D), lambda b: (b, 0, 0)),
            pl.BlockSpec((1, D), lambda b: (0, 0)),
            pl.BlockSpec((None, 1, S), lambda b: (b, 0, 0)),
            pl.BlockSpec((1, D), lambda b: (0, 0)),
            pl.BlockSpec((1, 1), lambda b: (0, 0)),
            pl.BlockSpec((D, z_dim), lambda b: (0, 0)),
            pl.BlockSpec((1, z_dim), lambda b: (0, 0)),
        ],
        out_specs=pl.BlockSpec((None, 1, z_dim), lambda b: (b, 0, 0)),
        compiler_params=pltpu.CompilerParams(
            dimension_semantics=("parallel",),
            vmem_limit_bytes=VMEM_LIMIT),
    )(h, params["final_norm"].reshape(1, D), mask_f,
      vae["fw"].reshape(1, D), vae["fb"].reshape(1, 1), vae["we"],
      vae["we_b"].reshape(1, z_dim))
    return out.reshape(B, z_dim)


# ----------------------------------------------------------------------------
# Transformer trunk / VAE glue
# ----------------------------------------------------------------------------
def rope_tables(S, Dh):
    inv_freq = 1.0 / (10000.0 ** (jnp.arange(0, Dh, 2, dtype=jnp.float32) / Dh))
    pos = jnp.arange(S, dtype=jnp.float32)
    freqs = jnp.outer(pos, inv_freq)                          # (S, Dh/2)
    emb = jnp.concatenate([freqs, freqs], axis=-1)            # (S, Dh)
    return jnp.cos(emb), jnp.sin(emb)


def transformer_forward(params, embeds, attention_mask, causal):
    """LLaMA-style trunk; returns PRE-final-norm hidden states (final norm is
    fused into the consumers: lm_head or VAE pooling).  Residual stream bf16."""
    B, S, D = embeds.shape
    H = params["n_heads"]
    Dh = D // H
    cos, sin = rope_tables(S, Dh)
    mask_f = attention_mask.astype(jnp.float32).reshape(B, 1, S)

    h = embeds.astype(jnp.bfloat16)                           # (B,S,D) bf16
    for lyr in params["layers"]:
        q, k, v = fused_rmsnorm_qkv_rope(h, lyr["ln1"], lyr["wqkv_h"], cos, sin)
        h = pallas_flash_attention(q, k, v, mask_f, lyr["wo_h"], h, causal)
        h = fused_rmsnorm_swiglu(h.reshape(B * S, D), lyr["ln2"],
                                 lyr["wg"], lyr["wu"], lyr["wd"]).reshape(B, S, D)
    return h


def input_ids_to_embeds(params, ids):
    # Gather instead of one_hot(ids) @ embed (pure DMA, no O(B*S*vocab*D) FLOPs).
    return jnp.take(params["embed"], ids, axis=0)


def forward(params, input_ids, attention_mask, decoder_prefix_ids,
            decoder_prefix_mask, sample_key, tau=1.0):
    """Mirrors DecoderOnlyTransformerVAE.forward; returns (logits, mean)."""
    input_ids_all = jnp.concatenate([decoder_prefix_ids, input_ids], axis=1)
    attn_mask_all = jnp.concatenate([decoder_prefix_mask, attention_mask], axis=1)

    # --- encode (encoder adapter, causal mask disabled) ---
    enc_embeds = input_ids_to_embeds(params, input_ids)
    h_enc = transformer_forward(params, enc_embeds, attention_mask, causal=False)
    mean = vae_encode(params, h_enc, attention_mask)          # final norm fused

    # --- sample + decode z ---
    z = mean + jax.random.normal(sample_key, mean.shape, jnp.float32) * (tau ** 0.5)
    z_embed = pallas_matmul(z, params["vae"]["wd"], extra=params["vae"]["wd_b"])
    z_embed = z_embed.astype(jnp.bfloat16)[:, None, :]

    # --- decoder pass (decoder adapter, causal) ---
    inputs_embeds = input_ids_to_embeds(params, input_ids_all)
    inputs_embeds = jnp.concatenate([z_embed, inputs_embeds], axis=1)
    attn_mask_dec = jnp.concatenate(
        [jnp.ones((attn_mask_all.shape[0], 1), attn_mask_all.dtype), attn_mask_all],
        axis=1)
    h_dec = transformer_forward(params, inputs_embeds, attn_mask_dec, causal=True)

    B, Sd, D = h_dec.shape
    logits = fused_rmsnorm_matmul(h_dec.reshape(B * Sd, D), params["final_norm"],
                                  params["lm_head"], out_dtype=jnp.float32)
    logits = logits.reshape(B, Sd, -1)[:, :, :params["vocab"]]   # drop lane pad
    return logits, mean


# ----------------------------------------------------------------------------
# Deterministic parameter init (weights pre-cast bf16, head-major QKV layout)
# ----------------------------------------------------------------------------
def init_params(key, vocab=256, d_model=256, n_heads=2, n_layers=2,
                d_mlp=512, z_dim=64):
    keys = iter(jax.random.split(key, 64))
    d_head = d_model // n_heads
    vocab_p = ((vocab + 127) // 128) * 128        # pad lm_head N dim to 128 mult

    def nrm(shape, scale=0.02, dtype=jnp.bfloat16):
        return (jax.random.normal(next(keys), shape, jnp.float32) * scale).astype(dtype)

    params = dict(
        vocab=vocab, d_model=d_model, n_heads=n_heads, z_dim=z_dim,
        embed=nrm((vocab, d_model)),
        lm_head=nrm((d_model, vocab_p)),
        final_norm=jnp.ones((d_model,), jnp.float32),
        layers=[],
    )
    for _ in range(n_layers):
        wqkv = nrm((d_model, 3 * d_model))        # fused Q/K/V projection
        # head-major, lane-aligned per-head [q_h | k_h | v_h] column layout
        wqkv_h = (wqkv.reshape(d_model, 3, n_heads, d_head)
                       .transpose(2, 0, 1, 3)
                       .reshape(n_heads, d_model, 3 * d_head))
        wo = nrm((d_model, d_model))
        wo_h = wo.reshape(n_heads, d_head, d_model)
        params["layers"].append(dict(
            ln1=jnp.ones((d_model,), jnp.float32),
            ln2=jnp.ones((d_model,), jnp.float32),
            wqkv_h=wqkv_h, wo_h=wo_h,
            wg=nrm((d_model, d_mlp)), wu=nrm((d_model, d_mlp)),
            wd=nrm((d_mlp, d_model)),
        ))

    # VAEComponent: f = Linear(d,1); w_e orthogonal; w_d.weight = w_e.weight.T
    # (kept fp32 — tiny, preserves the orthogonal-projection precision)
    fw = jax.random.normal(next(keys), (d_model, 1), jnp.float32)
    A = jax.random.normal(next(keys), (d_model, z_dim), jnp.float32)
    Q, _ = jnp.linalg.qr(A)                       # orthonormal cols -> w_e.weight.T
    params["vae"] = dict(
        fw=fw, fb=jnp.zeros((1,), jnp.float32),
        we=Q, we_b=jnp.zeros((z_dim,), jnp.float32),
        wd=Q.T, wd_b=jnp.zeros((d_model,), jnp.float32),
    )
    return params


# ----------------------------------------------------------------------------
if __name__ == "__main__":
    key = jax.random.PRNGKey(0)
    kp, kid, kpref, kz = jax.random.split(key, 4)

    params = init_params(kp)

    B, S, P = 2, 8, 4
    input_ids = jax.random.randint(kid, (B, S), 0, params["vocab"], jnp.int32)
    attention_mask = jnp.array(
        [[1, 1, 1, 1, 1, 1, 1, 1],
         [1, 1, 1, 1, 1, 1, 0, 0]], jnp.int32)               # second row padded
    decoder_prefix_ids = jax.random.randint(kpref, (B, P), 0, params["vocab"], jnp.int32)
    decoder_prefix_mask = jnp.ones((B, P), jnp.int32)

    logits, mean = forward(params, input_ids, attention_mask,
                           decoder_prefix_ids, decoder_prefix_mask, kz)
    jax.block_until_ready((logits, mean))

    assert logits.shape == (B, 1 + P + S, params["vocab"])
    assert mean.shape == (B, params["z_dim"])
    print("KERNEL_OK")
</pallas_src>

<mosaic_0001>
module attributes {stable_mosaic.version = 11 : i64} {
  func.func @_qkv_rope_kernel(%arg0: i32, %arg1: i32, %arg2: i32, %arg3: memref<1x8x256xbf16, #tpu.memory_space<vmem>>, %arg4: memref<1x256xf32, #tpu.memory_space<vmem>>, %arg5: memref<1x256x384xbf16, #tpu.memory_space<vmem>>, %arg6: memref<8x128xf32, #tpu.memory_space<vmem>>, %arg7: memref<8x128xf32, #tpu.memory_space<vmem>>, %arg8: memref<1x1x8x128xbf16, #tpu.memory_space<vmem>>, %arg9: memref<1x1x8x128xbf16, #tpu.memory_space<vmem>>, %arg10: memref<1x1x8x128xbf16, #tpu.memory_space<vmem>>, %arg11: memref<8x256xbf16, #tpu.memory_space<vmem>>) attributes {dimension_semantics = [#tpu.dimension_semantics<parallel>, #tpu.dimension_semantics<parallel>, #tpu.dimension_semantics<arbitrary>], iteration_bounds = array<i64: 2, 1, 2>, scalar_prefetch = 0 : i64, scratch_operands = 1 : i64, tpu.core_type = #tpu.core_type<tc>, window_params = [{transform_indices = @transform_0, window_bounds = array<i64: 1, 8, 256>}, {pipeline_mode = #tpu.pipeline_mode<synchronous>, transform_indices = @transform_1, window_bounds = array<i64: 1, 256>}, {transform_indices = @transform_2, window_bounds = array<i64: 1, 256, 384>}, {transform_indices = @transform_3, window_bounds = array<i64: 8, 128>}, {transform_indices = @transform_4, window_bounds = array<i64: 8, 128>}, {transform_indices = @transform_5, window_bounds = array<i64: 1, 1, 8, 128>}, {transform_indices = @transform_6, window_bounds = array<i64: 1, 1, 8, 128>}, {transform_indices = @transform_7, window_bounds = array<i64: 1, 1, 8, 128>}]} {
    %c0_i32 = arith.constant 0 : i32
    %0 = arith.cmpi eq, %arg2, %c0_i32 : i32
    %1 = arith.extui %0 : i1 to i32
    %c0_i32_0 = arith.constant 0 : i32
    %2 = arith.cmpi ne, %1, %c0_i32_0 : i32
    scf.if %2 {
      %c0_26 = arith.constant 0 : index
      %c0_27 = arith.constant 0 : index
      %c0_28 = arith.constant 0 : index
      %44 = vector.load %arg3[%c0_26, %c0_27, %c0_28] : memref<1x8x256xbf16, #tpu.memory_space<vmem>>, vector<1x8x256xbf16>
      %45 = vector.shape_cast %44 : vector<1x8x256xbf16> to vector<8x256xbf16>
      %46 = arith.extf %45 : vector<8x256xbf16> to vector<8x256xf32>
      %47 = arith.mulf %46, %46 : vector<8x256xf32>
      %cst_29 = arith.constant dense<0.000000e+00> : vector<8xf32>
      %48 = vector.multi_reduction <add>, %47, %cst_29 [1] : vector<8x256xf32> to vector<8xf32>
      %49 = vector.shape_cast %48 : vector<8xf32> to vector<8x1xf32>
      %cst_30 = arith.constant 2.560000e+02 : f32
      %50 = vector.broadcast %cst_30 : f32 to vector<8x1xf32>
      %51 = arith.divf %49, %50 : vector<8x1xf32>
      %cst_31 = arith.constant 9.99999997E-7 : f32
      %52 = vector.broadcast %cst_31 : f32 to vector<8x1xf32>
      %53 = arith.addf %51, %52 : vector<8x1xf32>
      %54 = math.rsqrt %53 : vector<8x1xf32>
      %55 = vector.broadcast %54 : vector<8x1xf32> to vector<8x256xf32>
      %56 = arith.mulf %46, %55 : vector<8x256xf32>
      %c0_32 = arith.constant 0 : index
      %c0_33 = arith.constant 0 : index
      %57 = vector.load %arg4[%c0_32, %c0_33] : memref<1x256xf32, #tpu.memory_space<vmem>>, vector<1x256xf32>
      %58 = vector.broadcast %57 : vector<1x256xf32> to vector<8x256xf32>
      %59 = arith.mulf %56, %58 : vector<8x256xf32>
      %60 = arith.truncf %59 : vector<8x256xf32> to vector<8x256xbf16>
      %c0_34 = arith.constant 0 : index
      %c0_35 = arith.constant 0 : index
      %61 = vector.load %arg11[%c0_34, %c0_35] : memref<8x256xbf16, #tpu.memory_space<vmem>>, vector<8x256xbf16>
      tpu.vector_store %arg11[%c0_34, %c0_35], %60 {strides = array<i32>} : memref<8x256xbf16, #tpu.memory_space<vmem>>, vector<8x256xbf16>,
    } else {
    }
    %c0 = arith.constant 0 : index
    %c0_1 = arith.constant 0 : index
    %3 = vector.load %arg11[%c0, %c0_1] : memref<8x256xbf16, #tpu.memory_space<vmem>>, vector<8x256xbf16>
    %c0_2 = arith.constant 0 : index
    %c0_3 = arith.constant 0 : index
    %c0_4 = arith.constant 0 : index
    %4 = vector.load %arg5[%c0_2, %c0_3, %c0_4] : memref<1x256x384xbf16, #tpu.memory_space<vmem>>, vector<1x256x384xbf16>
    %5 = vector.shape_cast %4 : vector<1x256x384xbf16> to vector<256x384xbf16>
    %cst = arith.constant dense<0.000000e+00> : vector<8x384xf32>
    %6 = tpu.matmul %3, %5, %cst {dimension_numbers = #tpu.dot_dimension_numbers<[1], [0], [0], [1], [0, 0, 1, 1], [], []>} : vector<8x256xbf16>, vector<256x384xbf16>, vector<8x384xf32> -> vector<8x384xf32>
    %c0_5 = arith.constant 0 : index
    %c0_6 = arith.constant 0 : index
    %7 = vector.load %arg6[%c0_5, %c0_6] : memref<8x128xf32, #tpu.memory_space<vmem>>, vector<8x128xf32>
    %c0_7 = arith.constant 0 : index
    %c0_8 = arith.constant 0 : index
    %8 = vector.load %arg7[%c0_7, %c0_8] : memref<8x128xf32, #tpu.memory_space<vmem>>, vector<8x128xf32>
    %9 = tpu.iota {dimensions = array<i32: 1>} : vector<1x128xi32>
    %c64_i32 = arith.constant 64 : i32
    %10 = vector.broadcast %c64_i32 : i32 to vector<1x128xi32>
    %11 = arith.cmpi slt, %9, %10 : vector<1x128xi32>
    %cst_9 = arith.constant -1.000000e+00 : f32
    %cst_10 = arith.constant 1.000000e+00 : f32
    %12 = vector.broadcast %cst_9 : f32 to vector<1x128xf32>
    %13 = vector.broadcast %cst_10 : f32 to vector<1x128xf32>
    %14 = arith.select %11, %12, %13 : vector<1x128xi1>, vector<1x128xf32>
    %15 = vector.extract_strided_slice %6 {offsets = [0, 0], sizes = [8, 128], strides = [1, 1]} : vector<8x384xf32> to vector<8x128xf32>
    %16 = vector.extract_strided_slice %6 {offsets = [0, 128], sizes = [8, 128], strides = [1, 1]} : vector<8x384xf32> to vector<8x128xf32>
    %17 = vector.extract_strided_slice %6 {offsets = [0, 256], sizes = [8, 128], strides = [1, 1]} : vector<8x384xf32> to vector<8x128xf32>
    %18 = arith.mulf %15, %7 : vector<8x128xf32>
    %c64_i32_11 = arith.constant 64 : i32
    %19 = tpu.dynamic_rotate %15 by %c64_i32_11 dim 1 : vector<8x128xf32>, i32 -> vector<8x128xf32>
    %20 = vector.broadcast %14 : vector<1x128xf32> to vector<8x128xf32>
    %21 = arith.mulf %19, %20 : vector<8x128xf32>
    %22 = arith.mulf %21, %8 : vector<8x128xf32>
    %23 = arith.addf %18, %22 : vector<8x128xf32>
    %cst_12 = arith.constant 0.0883883461 : f32
    %24 = vector.broadcast %cst_12 : f32 to vector<8x128xf32>
    %25 = arith.mulf %23, %24 : vector<8x128xf32>
    %26 = arith.mulf %16, %7 : vector<8x128xf32>
    %c64_i32_13 = arith.constant 64 : i32
    %27 = tpu.dynamic_rotate %16 by %c64_i32_13 dim 1 : vector<8x128xf32>, i32 -> vector<8x128xf32>
    %28 = vector.broadcast %14 : vector<1x128xf32> to vector<8x128xf32>
    %29 = arith.mulf %27, %28 : vector<8x128xf32>
    %30 = arith.mulf %29, %8 : vector<8x128xf32>
    %31 = arith.addf %26, %30 : vector<8x128xf32>
    %32 = arith.truncf %25 : vector<8x128xf32> to vector<8x128xbf16>
    %c0_14 = arith.constant 0 : index
    %c0_15 = arith.constant 0 : index
    %c0_16 = arith.constant 0 : index
    %c0_17 = arith.constant 0 : index
    %33 = vector.load %arg8[%c0_14, %c0_15, %c0_16, %c0_17] : memref<1x1x8x128xbf16, #tpu.memory_space<vmem>>, vector<1x1x8x128xbf16>
    %34 = vector.shape_cast %33 : vector<1x1x8x128xbf16> to vector<8x128xbf16>
    %35 = vector.shape_cast %32 : vector<8x128xbf16> to vector<1x1x8x128xbf16>
    tpu.vector_store %arg8[%c0_14, %c0_15, %c0_16, %c0_17], %35 {strides = array<i32>} : memref<1x1x8x128xbf16, #tpu.memory_space<vmem>>, vector<1x1x8x128xbf16>,
    %36 = arith.truncf %31 : vector<8x128xf32> to vector<8x128xbf16>
    %c0_18 = arith.constant 0 : index
    %c0_19 = arith.constant 0 : index
    %c0_20 = arith.constant 0 : index
    %c0_21 = arith.constant 0 : index
    %37 = vector.load %arg9[%c0_18, %c0_19, %c0_20, %c0_21] : memref<1x1x8x128xbf16, #tpu.memory_space<vmem>>, vector<1x1x8x128xbf16>
    %38 = vector.shape_cast %37 : vector<1x1x8x128xbf16> to vector<8x128xbf16>
    %39 = vector.shape_cast %36 : vector<8x128xbf16> to vector<1x1x8x128xbf16>
    tpu.vector_store %arg9[%c0_18, %c0_19, %c0_20, %c0_21], %39 {strides = array<i32>} : memref<1x1x8x128xbf16, #tpu.memory_space<vmem>>, vector<1x1x8x128xbf16>,
    %40 = arith.truncf %17 : vector<8x128xf32> to vector<8x128xbf16>
    %c0_22 = arith.constant 0 : index
    %c0_23 = arith.constant 0 : index
    %c0_24 = arith.constant 0 : index
    %c0_25 = arith.constant 0 : index
    %41 = vector.load %arg10[%c0_22, %c0_23, %c0_24, %c0_25] : memref<1x1x8x128xbf16, #tpu.memory_space<vmem>>, vector<1x1x8x128xbf16>
    %42 = vector.shape_cast %41 : vector<1x1x8x128xbf16> to vector<8x128xbf16>
    %43 = vector.shape_cast %40 : vector<8x128xbf16> to vector<1x1x8x128xbf16>
    tpu.vector_store %arg10[%c0_22, %c0_23, %c0_24, %c0_25], %43 {strides = array<i32>} : memref<1x1x8x128xbf16, #tpu.memory_space<vmem>>, vector<1x1x8x128xbf16>,
    return
  }
  func.func @transform_0(%arg0: i32, %arg1: i32, %arg2: i32) -> (i32, i32, i32) {
    %c0_i32 = arith.constant 0 : i32
    %c0_i32_0 = arith.constant 0 : i32
    return %arg0, %arg1, %c0_i32 : i32, i32, i32
  }
  func.func @transform_1(%arg0: i32, %arg1: i32, %arg2: i32) -> (i32, i32) {
    %c0_i32 = arith.constant 0 : i32
    %c0_i32_0 = arith.constant 0 : i32
    %c0_i32_1 = arith.constant 0 : i32
    return %c0_i32, %c0_i32_0 : i32, i32
  }
  func.func @transform_2(%arg0: i32, %arg1: i32, %arg2: i32) -> (i32, i32, i32) {
    %c0_i32 = arith.constant 0 : i32
    %c0_i32_0 = arith.constant 0 : i32
    %c0_i32_1 = arith.constant 0 : i32
    return %arg2, %c0_i32, %c0_i32_0 : i32, i32, i32
  }
  func.func @transform_3(%arg0: i32, %arg1: i32, %arg2: i32) -> (i32, i32) {
    %c0_i32 = arith.constant 0 : i32
    %c0_i32_0 = arith.constant 0 : i32
    return %arg1, %c0_i32 : i32, i32
  }
  func.func @transform_4(%arg0: i32, %arg1: i32, %arg2: i32) -> (i32, i32) {
    %c0_i32 = arith.constant 0 : i32
    %c0_i32_0 = arith.constant 0 : i32
    return %arg1, %c0_i32 : i32, i32
  }
  func.func @transform_5(%arg0: i32, %arg1: i32, %arg2: i32) -> (i32, i32, i32, i32) {
    %c0_i32 = arith.constant 0 : i32
    %c0_i32_0 = arith.constant 0 : i32
    return %arg0, %arg2, %arg1, %c0_i32 : i32, i32, i32, i32
  }
  func.func @transform_6(%arg0: i32, %arg1: i32, %arg2: i32) -> (i32, i32, i32, i32) {
    %c0_i32 = arith.constant 0 : i32
    %c0_i32_0 = arith.constant 0 : i32
    return %arg0, %arg2, %arg1, %c0_i32 : i32, i32, i32, i32
  }
  func.func @transform_7(%arg0: i32, %arg1: i32, %arg2: i32) -> (i32, i32, i32, i32) {
    %c0_i32 = arith.constant 0 : i32
    %c0_i32_0 = arith.constant 0 : i32
    return %arg0, %arg2, %arg1, %c0_i32 : i32, i32, i32, i32
  }
}

</mosaic_0001>

<bundles_post_ra>
// kernel: tpu_custom_call.1
= control target key start
LH: loop header
LB: loop body
LE: loop exit
PB: predicated region body
PF: predicated region fallthrough
CT: control target
= control target key end

     0   :  { %s2556_s0 = inlined_call_operand.hbm [shape: bf16[2,8,256], index: 0, kind: input, shape index: {}]   ;;  %s2557_s1 = inlined_call_operand.hbm [shape: f32[1,256], index: 1, kind: input, shape index: {}]   ;;  %s2558_s2 = inlined_call_operand.hbm [shape: bf16[2,256,384], index: 2, kind: input, shape index: {}]   ;;  %s2559_s3 = inlined_call_operand.hbm [shape: f32[8,128], index: 3, kind: input, shape index: {}]   ;;  %s2560_s4 = inlined_call_operand.hbm [shape: f32[8,128], index: 4, kind: input, shape index: {}]   ;;  %s2561_s5 = inlined_call_operand.hbm [shape: bf16[2,2,8,128], index: 5, kind: output, shape index: {0}]   ;;  %s2562_s6 = inlined_call_operand.hbm [shape: bf16[2,2,8,128], index: 6, kind: output, shape index: {1}]   ;;  %s2563_s7 = inlined_call_operand.hbm [shape: bf16[2,2,8,128], index: 7, kind: output, shape index: {2}]  }
   0x1   :  { %2587 = sst [smem:[#allocation36_spill]] %s2556_s0 }
   0x2   :  { %2588 = sst [smem:[#allocation37_spill]] %s2557_s1 }
   0x3   :  { %2589 = sst [smem:[#allocation38_spill]] %s2558_s2 }
   0x4   :  { %2590 = sst [smem:[#allocation39_spill]] %s2559_s3 }
   0x5   :  { %2591 = sst [smem:[#allocation40_spill]] %s2560_s4 }
   0x6   :  { %2592 = sst [smem:[#allocation41_spill]] %s2561_s5 }
   0x7   :  { %2593 = sst [smem:[#allocation42_spill]] %s2562_s6 }
   0x8   :  { %2594 = sst [smem:[#allocation43_spill]] %s2563_s7 }
   0x9   :  { %13 = vsyncpa [#allocation4], 0 }
   0xa   :  { %15 = vsyncpa [#allocation4 + $0x1], 0 }
   0xb   :  { %16 = vsyncpa [#allocation7], 0 }
   0xc   :  { %17 = vsyncpa [#allocation11], 0 }
   0xd   :  { %18 = vsyncpa [#allocation5], 0 }
   0xe   :  { %20 = vsyncpa [#allocation5 + $0x1], 0 }
   0xf   :  { %21 = vsyncpa [#allocation14], 0 }
  0x10   :  { %23 = vsyncpa [#allocation14 + $0x1], 0  ;;  %s2074_s24 = smov 0   ;;  %s2076_s25 = smov 0  }
  0x11   :  { %s2078_s26 = smov 0   ;;  %s2080_s27 = smov 0  }
  0x12   :  { %s2082_s28 = smov 0   ;;  %s2084_s29 = smov 0  }
  0x13   :  { %s2086_s30 = smov 0   ;;  %s2088_s8 = smov 0  }
  0x14   :  { %s2090_s9 = smov 0   ;;  %s2092_s10 = smov 0  }
  0x15   :  { %s2094_s11 = smov 0   ;;  %s2096_s12 = smov 0  }
  0x16   :  { %s2098_s13 = smov 0   ;;  %s2100_s14 = smov 0  }
  0x17 LB: > { %2595 = sst [smem:[#allocation23_spill]] %s1972_s24  ;;  %s2143_s15 = sadd.s32 4294967295, %s2024_s14   ;;  %s2024_s14 = sphi %s2100_s14, %s29_s14   ;;  %s2020_s13 = sphi %s2098_s13, %s2663_s13   ;;  %s2016_s12 = sphi %s2096_s12, %s2662_s12   ;;  %s2012_s11 = sphi %s2094_s11, %s2661_s11   ;;  %s2008_s10 = sphi %s2092_s10, %s2660_s10   ;;  %s2004_s9 = sphi %s2090_s9, %s2659_s9   ;;  %s2000_s8 = sphi %s2088_s8, %s2658_s8   ;;  %s1996_s30 = sphi %s2086_s30, %s2650_s30   ;;  %s1992_s29 = sphi %s2084_s29, %s2657_s29   ;;  %s1988_s28 = sphi %s2082_s28, %s2656_s28   ;;  %s1984_s27 = sphi %s2080_s27, %s2648_s27   ;;  %s1980_s26 = sphi %s2078_s26, %s2655_s26   ;;  %s1976_s25 = sphi %s2076_s25, %s2654_s25   ;;  %s1972_s24 = sphi %s2074_s24, %s2647_s24  }
  0x18   : > { %2596 = sst [smem:[#allocation24_spill]] %s1976_s25  ;;  %s2564_s16 = sadd.s32 4294967294, %s2024_s14  }
  0x19   : > { %2597 = sst [smem:[#allocation25_spill]] %s1988_s28  ;;  %p71_p0 = scmp.eq.s32.totalorder %s2143_s15, 0 }
  0x1a   : > { %2598 = sst [smem:[#allocation26_spill]] %s2000_s8  ;;  %p117_p1 = scmp.ne.s32.totalorder %s1988_s28, %s1984_s27 }
  0x1b   : > { %2599 = sst [smem:[#allocation27_spill]] %s2008_s10  ;;  %p196_p2 = scmp.ne.s32.totalorder %s1980_s26, %s1976_s25 }
  0x1c   : > { %2600 = sst [smem:[#allocation28_spill]] %s2012_s11  ;;  %p197_p3 = scmp.eq.s32.totalorder %s2143_s15, 3 }
  0x1d   : > { %p2153_p4 = por %p117_p1, %p71_p0  ;;  %p202_p5 = scmp.ne.s32.totalorder %s1976_s25, %s1972_s24 }
  0x1e   : > { %p2159_p6 = por %p197_p3, %p196_p2  ;;  %p203_p7 = scmp.eq.s32.totalorder %s2564_s16, 3 }
  0x1f   : > { %s2601_s17 = scalar_select %p2153_p4, 1, 0 }
  0x20   : > { %s2603_s18 = scalar_select %p2159_p6, 1, 0 }
  0x21   : > { %2602 = sst [smem:[#allocation29_spill]] %s2601_s17  ;;  %p1198_p8 = scmp.ge.s32.totalorder %s2024_s14, 1 }
  0x22   : > { %2604 = sst [smem:[#allocation30_spill]] %s2603_s18  ;;  %p270_p9 = scmp.lt.s32.totalorder %s2024_s14, 5 }
  0x23   : > { %p2167_p10 = por %p203_p7, %p202_p5  ;;  %s2608_s1 = sld [smem:[#allocation37_spill]] }
  0x24   : > { %p2171_p11 = pnand %p1198_p8, %p270_p9  ;;  %s2026_s27 = smov [#allocation6]  }
  0x25   : > { %s2605_s19 = scalar_select %p2167_p10, 1, 0 }
  0x26   : > { %p1493_p12 = pneg %p2171_p11  ;;  %s284_s16 = sshll.u32 %s2026_s27, 4  ;;  %s285_s16 = int_to_ptr.vmem [resolvable:$true] %s284_s16 }
  0x27   : > { %2606 = sst [smem:[#allocation31_spill]] %s2605_s19  ;;  %s41_s21 = sadd.s32 1, %s2016_s12 }
  0x28   : > { %p2182_p13 = pnand %p1493_p12, %p71_p0  ;;  %s48_s22 = sadd.s32 1, %s2020_s13 }
  0x29   : > { %s282_s23 = sshll.u32 %s2608_s1, 4  ;;  %p42_p1 = scmp.ge.s32.totalorder %s41_s21, 2  ;;  %s283_s23 = int_to_ptr.hbm [resolvable:$true] %s282_s23 }
  0x2a   : > { %1496 = dma.hbm_to_vmem [thread:$0]  (!%p2182_p13), %s283_s23, 32, %s285_s16, [#allocation7]  }
  0x2b   : > { %s57_s1 = sadd.s32 1, %s2004_s9  ;;  %p64_p2 = scmp.ne.s32.totalorder %s2004_s9, %s2000_s8 }
  0x2c   : > { %p65_p3 = scmp.eq.s32.totalorder %s2024_s14, 0  ;;  %s2665_s21 = smov (%p42_p1, %s41_s21), 0 }
  0x2d   : > { %2610 = sst [smem:[#allocation32_spill]] %s2665_s21  ;;  %s2667_s22 = smov (!%p42_p1, %s48_s22), %s2020_s13 }
  0x2e   : > { %p2199_p5 = por %p65_p3, %p64_p2  ;;  %p70_p7 = scmp.ne.s32.totalorder %s2000_s8, %s1996_s30 }
  0x2f   : > { %p50_p8 = scmp.ge.s32.totalorder %s2667_s22, 2  ;;  %s101_s23 = ssub.s32 %s2016_s12, %s2665_s21 }
  0x30   : > { %p2209_p9 = por %p71_p0, %p70_p7  ;;  %p102_p12 = scmp.eq.s32.totalorder %s101_s23, 0 }
  0x31   : > { %s2669_s22 = smov (%p50_p8, %s2667_s22), 0  ;;  %s104_s24 = sadd.s32 1, %s1992_s29 }
  0x32   : > { %s2612_s27 = scalar_select %p2209_p9, 1, 0 }
  0x33   : > { %2614 = sst [smem:[#allocation34_spill]] %s2669_s22  ;;  %p111_p1 = scmp.ne.s32.totalorder %s1992_s29, %s1988_s28 }
  0x34   : > { %2613 = sst [smem:[#allocation33_spill]] %s2612_s27  ;;  %s52_s7 = ssub.s32 %s2020_s13, %s2669_s22 }
  0x35   : > { %s186_s18 = sadd.s32 1, %s1980_s26  ;;  %p55_p2 = scmp.eq.s32.totalorder %s52_s7, 0 }
  0x36   : > { %p2223_p10 = por %p111_p1, %p65_p3  ;;  %s181_s5 = sor.u32 %s101_s23, %s52_s7 }
  0x37   : > { %s2228_s21 = scalar_select %p102_p12, %s1992_s29, %s104_s24  }
  0x38   : > { %s2231_s6 = scalar_select %p55_p2, %s2004_s9, %s57_s1  }
  0x39   : > { %2616 = sst [smem:[#allocation35_spill]] %s2228_s21  ;;  %p1523_p7 = scmp.lt.s32.totalorder %s2024_s14, 4 }
  0x3a   : > { %p184_p8 = scmp.eq.s32.totalorder %s181_s5, 0  ;;  %s323_s11 = sand.u32 1, %s2024_s14  }
  0x3b   : > { %s325_s22 = sand.u32 1, %s2004_s9   ;;  %s1419_s17 = sshll.u32 %s2020_s13, 3 }
  0x3c   : > { %s2237_s10 = scalar_select %p184_p8, %s1980_s26, %s186_s18  }
  0x3d   : > { %s1203_s25 = sshll.u32 %s325_s22, 3  ;;  %s2617_s0 = sld [smem:[#allocation36_spill]] }
  0x3e   : > { %s327_s8 = scalar_lea.vmem [#allocation3], %s1203_s25  ;;  %p1504_p3 = pnand %p1523_p7, %p2199_p5 }
  0x3f   : > { %s338_s1 = sshll.u32 %s327_s8, 4  ;;  %p2251_p12 = pnand %p1523_p7, %p2223_p10  ;;  %s339_s1 = int_to_ptr.vmem [resolvable:$true] %s338_s1 }
  0x40   : > { %s2619_s3 = sld [smem:[#allocation39_spill]]  ;;  %s324_s25 = scalar_lea.sflag [#allocation4], %s323_s11 }
  0x41   : > { %s2027_s8 = smov [#allocation9]   ;;  %s2620_s4 = sld [smem:[#allocation40_spill]] }
  0x42   : > { %s2028_s27 = smov [#allocation10]   ;;  %s1469_s11 = smul.u32 384, %s2016_s12 }
  0x43   : > { %s334_s24 = scalar_lea.hbm %s2617_s0, %s1419_s17  ;;  %s298_s17 = sshll.u32 %s2027_s8, 4  ;;  %s299_s17 = int_to_ptr.vmem [resolvable:$true] %s298_s17 }
  0x44   : > { %s336_s21 = sshll.u32 %s334_s24, 4  ;;  %s312_s30 = sshll.u32 %s2028_s27, 4  ;;  %s337_s21 = int_to_ptr.hbm [resolvable:$true] %s336_s21  ;;  %s313_s30 = int_to_ptr.vmem [resolvable:$true] %s312_s30 }
  0x45   : > { %1506 = dma.hbm_to_vmem [thread:$0]  (!%p1504_p3), %s337_s21, 128, %s339_s1, %s324_s25  }
  0x46   : > { %s296_s28 = sshll.u32 %s2619_s3, 4  ;;  %s347_s24 = sand.u32 1, %s1992_s29   ;;  %s297_s28 = int_to_ptr.hbm [resolvable:$true] %s296_s28 }
  0x47   : > { %s310_s23 = sshll.u32 %s2620_s4, 4  ;;  %s1468_s7 = smul.u32 384, %s347_s24  ;;  %s311_s23 = int_to_ptr.hbm [resolvable:$true] %s310_s23 }
  0x48   : > { %1499 = dma.hbm_to_vmem [thread:$0]  (!%p2182_p13), %s297_s28, 128, %s299_s17, [#allocation7]  }
  0x49   : > { %1502 = dma.hbm_to_vmem [thread:$0]  (!%p2182_p13), %s311_s23, 128, %s313_s30, [#allocation11]  }
  0x4a   : > { %s349_s21 = scalar_lea.vmem [#allocation8], %s1468_s7  ;;  %s2621_s2 = sld [smem:[#allocation38_spill]] }
  0x4b   : > { %s357_s1 = sshll.u32 %s349_s21, 4  ;;  %s2029_s28 = smov 192   ;;  %s358_s1 = int_to_ptr.vmem [resolvable:$true] %s357_s1 }
  0x4c   : > { %s2030_s17 = smov 12   ;;  %s2622_s19 = sld [smem:[#allocation26_spill]] (!%p2171_p11) }
  0x4d   : > { %s2582_s23 = sand.u32 (!%p2171_p11), 1, %s2143_s15  }
  0x4e   : > { %369 = sbr.rel (%p2171_p11) target bundleno = 587 (0x24b), region = 40  ;;  %s372_s24 = scalar_lea.sflag (!%p2171_p11), [#allocation4], %s2582_s23 }
  0x50   : > { %s354_s0 = scalar_lea.hbm %s2621_s2, %s1469_s11 }
  0x51   : > { %s355_s22 = sshll.u32 %s354_s0, 4  ;;  %s356_s22 = int_to_ptr.hbm [resolvable:$true] %s355_s22 }
  0x52   : > { %1509 = dma.hbm_to_vmem [thread:$0]  (!%p2251_p12), %s356_s22, 6144, %s358_s1, %s324_s25, %s2029_s28, %s2029_s28, %s2030_s17  }
  0x53   : > { %s373_s27 = sand.u32 1, %s2622_s19  }
  0x54   : > { %s1208_s30 = sshll.u32 %s373_s27, 3 }
  0x55   : > { %s375_s7 = scalar_lea.vmem [#allocation3], %s1208_s30 }
  0x56   : > { %1943 = dma.done.wait (%p2209_p9), %s372_s24, 128  }
  0x57   : > { %1945 = vsyncadd (%p2209_p9), %s372_s24, 4294967168 }
  0x58   : > { %1947 = dma.done.wait (%p71_p0), [#allocation7], 32  }
  0x59   : > { %1949 = vsyncadd (%p71_p0), [#allocation7], 4294967264  ;;  %s2624_s0 = sld [smem:[#allocation25_spill]] }
  0x5f   : > { %s388_s5 = sand.u32 1, %s2624_s0  }
  0x60   : > { %s1470_s25 = smul.u32 384, %s388_s5 }
  0x62   : > { %s2287_s11 = scalar_lea.vmem [#allocation8], %s1470_s25 }
  0x63   : > { %1951 = dma.done.wait (%p2153_p4), %s372_s24, 6144  }
  0x64   : > { %1953 = vsyncadd (%p2153_p4), %s372_s24, 4294961152 }
  0x65   : > { %1955 = dma.done.wait (%p71_p0), [#allocation7], 128  }
  0x66   : > { %1957 = vsyncadd (%p71_p0), [#allocation7], 4294967168 }
  0x67   : > { %1959 = dma.done.wait (%p71_p0), [#allocation11], 128  }
  0x68   : > { %1961 = vsyncadd (%p71_p0), [#allocation11], 4294967168  ;;  %s2626_s21 = sld [smem:[#allocation24_spill]] }
  0x69   : > { %s2627_s17 = sld [smem:[#allocation27_spill]] }
  0x6e   : > { %s2584_s1 = sand.u32 1, %s2626_s21  }
  0x6f   : > { %s2304_s18 = sshll.u32 %s2584_s1, 2  ;;  %p1215_p4 = scmp.ne.s32.totalorder %s2627_s17, 0 }
  0x70   : > { %s2585_s8 = scalar_lea.vmem [#allocation12], %s2304_s18  ;;  %s2586_s22 = scalar_lea.vmem [#allocation13], %s2304_s18 }
  0x71   : > { %s2583_s28 = scalar_lea.vmem [#allocation15], %s2304_s18  ;;  %450 = sbr.rel (%p1215_p4) target bundleno = 270 (0x10e), region = 64 }
  0x76   : > { %v451_v0 = vld [vmem:[%s375_s7] sm:$0xff]  ;;  %v2031_v6 = vmov 256.0   ;;  %v480_v21 = vld [vmem:[#allocation6] sm:$0x3] }
  0x77   : > { %v452_v1 = vunpack.c.l.bf16 %v451_v0  ;;  %v453_v2 = vunpack.c.h.bf16 %v451_v0  ;;  %1648 = vrcp.f32 %v2031_v6  ;;  %v482_v23 = vperm.slane %v480_v21, 0 }
  0x78   : > { %v483_v24 = vperm.slane %v480_v21, 1 }
  0x79   : > { %v454_v3 = vmul.f32 %v452_v1, %v452_v1  ;;  %v455_v4 = vmul.f32 %v453_v2, %v453_v2 }
  0x7b   : > { %v456_v5 = vadd.f32 %v455_v4, %v454_v3 }
  0x7d   : > { %457 = vadd.xlane.f32.xlu0 %v456_v5  ;;  %v1649_v7 = vpop.eup %1648 }
  0x7e   : > { %v460_v8 = vmul.f32 256.0, %v1649_v7  ;;  %vm464_vm0 = vweird.f32 %v1649_v7 }
  0x80   : > { %v461_v9 = vsub.f32 1.0, %v460_v8 }
  0x82   : > { %v462_v10 = vmul.f32 %v1649_v7, %v461_v9 }
  0x84   : > { %v463_v11 = vadd.f32 %v1649_v7, %v462_v10 }
  0x86   : > { %v465_v12 = vsel %vm464_vm0, %v1649_v7, %v463_v11 }
  0xf0   : > { %v458_v13 = vpop.xlane.xlu0 %457 }
  0xf1   : > { %v466_v14 = vmul.f32 %v465_v12, %v458_v13 }
  0xf3   : > { %v467_v15 = vadd.f32 1e-06, %v466_v14 }
  0xf5   : > { %1650 = vrsqrt.f32 %v467_v15  ;;  %vm474_vm2 = vweird.f32 %v467_v15 }
  0xfb   : > { %v1651_v16 = vpop.eup %1650 }
  0xfc   : > { %v469_v17 = vmul.f32 %v1651_v16, %v467_v15  ;;  %vm475_vm1 = vweird.f32 %v1651_v16 }
  0xfd   : > { %vm476_vm3 = vmor %vm474_vm2, %vm475_vm1 }
  0xfe   : > { %v470_v18 = vmul.f32 %v1651_v16, %v469_v17 }
 0x100   : > { %v471_v19 = vmul.f32 0.5, %v470_v18 }
 0x102   : > { %v472_v20 = vsub.f32 1.5, %v471_v19 }
 0x104   : > { %v473_v22 = vmul.f32 %v1651_v16, %v472_v20 }
 0x106   : > { %v477_v25 = vsel %vm476_vm3, %v1651_v16, %v473_v22 }
 0x107   : > { %v478_v26 = vmul.f32 %v477_v25, %v452_v1  ;;  %v479_v27 = vmul.f32 %v477_v25, %v453_v2 }
 0x109   : > { %v486_v28 = vmul.f32 %v482_v23, %v478_v26  ;;  %v487_v29 = vmul.f32 %v483_v24, %v479_v27 }
 0x10b   : > { %v488_v30 = vpack.c.bf16 %v487_v29, %v486_v28 }
 0x10d   : > { %489 = vst [vmem:[#allocation2] sm:$0xff] %v488_v30 }
 0x10e PF: > { %v1302_v31 = vld [vmem:[%s2287_s11 + $0xa8] sm:$0xf]  ;;  %v1442_v32 = vld [vmem:[%s2287_s11 + $0xb0] sm:$0xf0]  ;;  %v1441_v36 = vld [vmem:[%s2287_s11 + $0xac] sm:$0xf] }
 0x10f   : > { %v1398_v33 = vld [vmem:[%s2287_s11 + $0x168] sm:$0xf]  ;;  %v1303_v34 = vor.u32 %v1442_v32, %v1302_v31  ;;  %v1466_v35 = vld [vmem:[%s2287_s11 + $0x170] sm:$0xf0]  ;;  %v1304_v37 = vld [vmem:[%s2287_s11 + $0xb4] sm:$0xf0] }
 0x110   : > { %v1399_v38 = vor.u32 %v1466_v35, %v1398_v33  ;;  %v1307_v39 = vor.u32 %v1441_v36, %v1304_v37  ;;  %v1465_v40 = vld [vmem:[%s2287_s11 + $0x16c] sm:$0xf]  ;;  %v1400_v41 = vld [vmem:[%s2287_s11 + $0x174] sm:$0xf0]  ;;  %v1290_v42 = vld [vmem:[%s2287_s11 + $0x90] sm:$0xf] }
 0x111   : > { %818 = vmatpush.bf16.msra.mxu0 %v1303_v34  ;;  %v1403_v43 = vor.u32 %v1465_v40, %v1400_v41  ;;  %v1439_v44 = vld [vmem:[%s2287_s11 + $0x98] sm:$0xf0]  ;;  %v1386_v45 = vld [vmem:[%s2287_s11 + $0x150] sm:$0xf]  ;;  %v1438_v49 = vld [vmem:[%s2287_s11 + $0x94] sm:$0xf] }
 0x112   : > { %v1463_v46 = vld [vmem:[%s2287_s11 + $0x158] sm:$0xf0]  ;;  %831 = vmatpush.bf16.msra.mxu1 %v1399_v38  ;;  %844 = vmatpush.bf16.msra.mxu2 %v1307_v39  ;;  %v1291_v47 = vor.u32 %v1439_v44, %v1290_v42  ;;  %v1292_v50 = vld [vmem:[%s2287_s11 + $0x9c] sm:$0xf0]  ;;  %v1462_v51 = vld [vmem:[%s2287_s11 + $0x154] sm:$0xf] }
 0x113   : > { %v1387_v48 = vor.u32 %v1463_v46, %v1386_v45  ;;  %857 = vmatpush.bf16.msra.mxu3 %v1403_v43  ;;  %v1295_v52 = vor.u32 %v1438_v49, %v1292_v50  ;;  %v1388_v53 = vld [vmem:[%s2287_s11 + $0x15c] sm:$0xf0]  ;;  %v1278_v54 = vld [vmem:[%s2287_s11 + $0x78] sm:$0xf]  ;;  %v1436_v55 = vld [vmem:[%s2287_s11 + $0x80] sm:$0xf0] }
 0x114   : > { %v1391_v56 = vor.u32 %v1462_v51, %v1388_v53  ;;  %v1374_v57 = vld [vmem:[%s2287_s11 + $0x138] sm:$0xf]  ;;  %v1460_v58 = vld [vmem:[%s2287_s11 + $0x140] sm:$0xf0]  ;;  %v1435_v59 = vld [vmem:[%s2287_s11 + $0x7c] sm:$0xf]  ;;  %v1279_v60 = vor.u32 %v1436_v55, %v1278_v54 }
 0x115   : > { %819 = vmatpush.bf16.msra.mxu0 %v1291_v47  ;;  %v1280_v61 = vld [vmem:[%s2287_s11 + $0x84] sm:$0xf0]  ;;  %v1459_v62 = vld [vmem:[%s2287_s11 + $0x13c] sm:$0xf]  ;;  %v1375_v0 = vor.u32 %v1460_v58, %v1374_v57  ;;  %v1266_v2 = vld [vmem:[%s2287_s11 + $0x60] sm:$0xf] }
 0x116   : > { %v1376_v63 = vld [vmem:[%s2287_s11 + $0x144] sm:$0xf0]  ;;  %832 = vmatpush.bf16.msra.mxu1 %v1387_v48  ;;  %845 = vmatpush.bf16.msra.mxu2 %v1295_v52  ;;  %v1283_v1 = vor.u32 %v1435_v59, %v1280_v61  ;;  %v1433_v3 = vld [vmem:[%s2287_s11 + $0x68] sm:$0xf0]  ;;  %v1362_v4 = vld [vmem:[%s2287_s11 + $0x120] sm:$0xf] }
 0x117   : > { %858 = vmatpush.bf16.msra.mxu3 %v1391_v56  ;;  %v1379_v5 = vor.u32 %v1459_v62, %v1376_v63  ;;  %v1457_v6 = vld [vmem:[%s2287_s11 + $0x128] sm:$0xf0]  ;;  %v1432_v7 = vld [vmem:[%s2287_s11 + $0x64] sm:$0xf]  ;;  %v1268_v8 = vld [vmem:[%s2287_s11 + $0x6c] sm:$0xf0]  ;;  %v1267_v11 = vor.u32 %v1433_v3, %v1266_v2 }
 0x118   : > { %v1456_v9 = vld [vmem:[%s2287_s11 + $0x124] sm:$0xf]  ;;  %v1364_v10 = vld [vmem:[%s2287_s11 + $0x12c] sm:$0xf0]  ;;  %v1363_v12 = vor.u32 %v1457_v6, %v1362_v4  ;;  %v1271_v13 = vor.u32 %v1432_v7, %v1268_v8  ;;  %v1254_v14 = vld [vmem:[%s2287_s11 + $0x48] sm:$0xf] }
 0x119   : > { %820 = vmatpush.bf16.msra.mxu0 %v1279_v60  ;;  %v1430_v15 = vld [vmem:[%s2287_s11 + $0x50] sm:$0xf0]  ;;  %v1350_v16 = vld [vmem:[%s2287_s11 + $0x108] sm:$0xf]  ;;  %v1367_v17 = vor.u32 %v1456_v9, %v1364_v10  ;;  %v1429_v19 = vld [vmem:[%s2287_s11 + $0x4c] sm:$0xf] }
 0x11a   : > { %833 = vmatpush.bf16.msra.mxu1 %v1375_v0  ;;  %846 = vmatpush.bf16.msra.mxu2 %v1283_v1  ;;  %v1454_v18 = vld [vmem:[%s2287_s11 + $0x110] sm:$0xf0]  ;;  %v1256_v20 = vld [vmem:[%s2287_s11 + $0x54] sm:$0xf0]  ;;  %v1453_v21 = vld [vmem:[%s2287_s11 + $0x10c] sm:$0xf]  ;;  %v1255_v23 = vor.u32 %v1430_v15, %v1254_v14 }
 0x11b   : > { %859 = vmatpush.bf16.msra.mxu3 %v1379_v5  ;;  %v1352_v22 = vld [vmem:[%s2287_s11 + $0x114] sm:$0xf0]  ;;  %v1351_v24 = vor.u32 %v1454_v18, %v1350_v16  ;;  %v1259_v25 = vor.u32 %v1429_v19, %v1256_v20  ;;  %v1242_v26 = vld [vmem:[%s2287_s11 + $0x30] sm:$0xf]  ;;  %v1427_v27 = vld [vmem:[%s2287_s11 + $0x38] sm:$0xf0] }
 0x11c   : > { %v1338_v28 = vld [vmem:[%s2287_s11 + $0xf0] sm:$0xf]  ;;  %v1355_v29 = vor.u32 %v1453_v21, %v1352_v22  ;;  %v1451_v30 = vld [vmem:[%s2287_s11 + $0xf8] sm:$0xf0]  ;;  %v1426_v31 = vld [vmem:[%s2287_s11 + $0x34] sm:$0xf]  ;;  %v1243_v35 = vor.u32 %v1427_v27, %v1242_v26 }
 0x11d   : > { %821 = vmatpush.bf16.msra.mxu0 %v1267_v11  ;;  %v1244_v32 = vld [vmem:[%s2287_s11 + $0x3c] sm:$0xf0]  ;;  %v1450_v33 = vld [vmem:[%s2287_s11 + $0xf4] sm:$0xf]  ;;  %v1339_v36 = vor.u32 %v1451_v30, %v1338_v28  ;;  %v1230_v38 = vld [vmem:[%s2287_s11 + $0x18] sm:$0xf] }
 0x11e   : > { %834 = vmatpush.bf16.msra.mxu1 %v1363_v12  ;;  %847 = vmatpush.bf16.msra.mxu2 %v1271_v13  ;;  %v1340_v34 = vld [vmem:[%s2287_s11 + $0xfc] sm:$0xf0]  ;;  %v1247_v37 = vor.u32 %v1426_v31, %v1244_v32  ;;  %v1424_v39 = vld [vmem:[%s2287_s11 + $0x20] sm:$0xf0]  ;;  %v1326_v40 = vld [vmem:[%s2287_s11 + $0xd8] sm:$0xf] }
 0x11f   : > { %860 = vmatpush.bf16.msra.mxu3 %v1367_v17  ;;  %v1343_v41 = vor.u32 %v1450_v33, %v1340_v34  ;;  %v1448_v42 = vld [vmem:[%s2287_s11 + $0xe0] sm:$0xf0]  ;;  %v1423_v43 = vld [vmem:[%s2287_s11 + $0x1c] sm:$0xf]  ;;  %v1232_v44 = vld [vmem:[%s2287_s11 + $0x24] sm:$0xf0]  ;;  %v1231_v47 = vor.u32 %v1424_v39, %v1230_v38 }
 0x120   : > { %v1447_v45 = vld [vmem:[%s2287_s11 + $0xdc] sm:$0xf]  ;;  %v1328_v46 = vld [vmem:[%s2287_s11 + $0xe4] sm:$0xf0]  ;;  %v1218_v48 = vld [vmem:[%s2287_s11] sm:$0xf]  ;;  %v1327_v50 = vor.u32 %v1448_v42, %v1326_v40  ;;  %v1235_v51 = vor.u32 %v1423_v43, %v1232_v44 }
 0x121   : > { %822 = vmatpush.bf16.msra.mxu0 %v1255_v23  ;;  %v490_v49 = vld [vmem:[#allocation2] sm:$0xff]  ;;  %v1314_v53 = vld [vmem:[%s2287_s11 + $0xc0] sm:$0xf]  ;;  %v1331_v55 = vor.u32 %v1447_v45, %v1328_v46  ;;  %v1220_v57 = vld [vmem:[%s2287_s11 + $0xc] sm:$0xf0]  ;;  %s2032_s19 = smov 64  }
 0x122   : > { %835 = vmatpush.bf16.msra.mxu1 %v1351_v24  ;;  %848 = vmatpush.bf16.msra.mxu2 %v1259_v25  ;;  %v1421_v52 = vld [vmem:[%s2287_s11 + $0x8] sm:$0xf0]  ;;  %v1420_v56 = vld [vmem:[%s2287_s11 + $0x4] sm:$0xf]  ;;  %v1316_v59 = vld [vmem:[%s2287_s11 + $0xcc] sm:$0xf0]  ;;  %v556_v60 = vunpack.c.l.b16 %v490_v49  ;;  %v557_v0 = vunpack.c.h.b16 %v490_v49 }
 0x123   : > { %861 = vmatpush.bf16.msra.mxu3 %v1355_v29  ;;  %v1445_v54 = vld [vmem:[%s2287_s11 + $0xc8] sm:$0xf0]  ;;  %v1444_v58 = vld [vmem:[%s2287_s11 + $0xc4] sm:$0xf]  ;;  %v1310_v61 = vld [vmem:[%s2287_s11 + $0xb0] sm:$0xf]  ;;  %v1219_v63 = vor.u32 %v1421_v52, %v1218_v48  ;;  %v1223_v4 = vor.u32 %v1420_v56, %v1220_v57 }
 0x124   : > { %v1443_v62 = vld [vmem:[%s2287_s11 + $0xb8] sm:$0xf0]  ;;  %v1406_v1 = vld [vmem:[%s2287_s11 + $0x170] sm:$0xf]  ;;  %v1315_v3 = vor.u32 %v1445_v54, %v1314_v53  ;;  %v1319_v5 = vor.u32 %v1444_v58, %v1316_v59  ;;  %v2378_v7 = vpack.c.b16 %v556_v60, %v556_v60  ;;  %v1298_v9 = vld [vmem:[%s2287_s11 + $0x98] sm:$0xf]  ;;  %v2382_v11 = vpack.c.b16 %v557_v0, %v557_v0 }
 0x125   : > { %823 = vmatpush.bf16.msra.mxu0 %v1243_v35  ;;  %v1467_v2 = vld [vmem:[%s2287_s11 + $0x178] sm:$0xf0]  ;;  %v1311_v6 = vor.u32 %v1443_v62, %v1310_v61  ;;  %v1440_v10 = vld [vmem:[%s2287_s11 + $0xa0] sm:$0xf0]  ;;  %v1394_v12 = vld [vmem:[%s2287_s11 + $0x158] sm:$0xf] }
 0x126   : > { %836 = vmatpush.bf16.msra.mxu1 %v1339_v36  ;;  %849 = vmatpush.bf16.msra.mxu2 %v1247_v37  ;;  %v1407_v8 = vor.u32 %v1467_v2, %v1406_v1  ;;  %v1464_v13 = vld [vmem:[%s2287_s11 + $0x160] sm:$0xf0]  ;;  %v1299_v14 = vor.u32 %v1440_v10, %v1298_v9  ;;  %v1286_v16 = vld [vmem:[%s2287_s11 + $0x80] sm:$0xf]  ;;  %v1437_v17 = vld [vmem:[%s2287_s11 + $0x88] sm:$0xf0] }
 0x127   : > { %862 = vmatpush.bf16.msra.mxu3 %v1343_v41  ;;  %v1395_v15 = vor.u32 %v1464_v13, %v1394_v12  ;;  %v1382_v18 = vld [vmem:[%s2287_s11 + $0x140] sm:$0xf]  ;;  %v1461_v19 = vld [vmem:[%s2287_s11 + $0x148] sm:$0xf0]  ;;  %v1287_v20 = vor.u32 %v1437_v17, %v1286_v16  ;;  %v1274_v22 = vld [vmem:[%s2287_s11 + $0x68] sm:$0xf] }
 0x128   : > { %v1383_v21 = vor.u32 %v1461_v19, %v1382_v18  ;;  %v1434_v23 = vld [vmem:[%s2287_s11 + $0x70] sm:$0xf0]  ;;  %v1370_v24 = vld [vmem:[%s2287_s11 + $0x128] sm:$0xf]  ;;  %v1262_v28 = vld [vmem:[%s2287_s11 + $0x50] sm:$0xf] }
 0x129   : > { %824 = vmatpush.bf16.msra.mxu0 %v1231_v47  ;;  %v1458_v25 = vld [vmem:[%s2287_s11 + $0x130] sm:$0xf0]  ;;  %v1275_v26 = vor.u32 %v1434_v23, %v1274_v22  ;;  %v1431_v29 = vld [vmem:[%s2287_s11 + $0x58] sm:$0xf0]  ;;  %v1358_v30 = vld [vmem:[%s2287_s11 + $0x110] sm:$0xf] }
 0x12a   : > { %837 = vmatpush.bf16.msra.mxu1 %v1327_v50  ;;  %850 = vmatpush.bf16.msra.mxu2 %v1235_v51  ;;  %v1371_v27 = vor.u32 %v1458_v25, %v1370_v24  ;;  %v1455_v31 = vld [vmem:[%s2287_s11 + $0x118] sm:$0xf0]  ;;  %v1263_v32 = vor.u32 %v1431_v29, %v1262_v28  ;;  %v1250_v34 = vld [vmem:[%s2287_s11 + $0x38] sm:$0xf]  ;;  %v1428_v35 = vld [vmem:[%s2287_s11 + $0x40] sm:$0xf0] }
 0x12b   : > { %863 = vmatpush.bf16.msra.mxu3 %v1331_v55  ;;  %v1359_v33 = vor.u32 %v1455_v31, %v1358_v30  ;;  %v1346_v36 = vld [vmem:[%s2287_s11 + $0xf8] sm:$0xf]  ;;  %v1452_v37 = vld [vmem:[%s2287_s11 + $0x100] sm:$0xf0]  ;;  %v1251_v38 = vor.u32 %v1428_v35, %v1250_v34  ;;  %v1238_v40 = vld [vmem:[%s2287_s11 + $0x20] sm:$0xf] }
 0x12c   : > { %v1347_v39 = vor.u32 %v1452_v37, %v1346_v36  ;;  %v1425_v41 = vld [vmem:[%s2287_s11 + $0x28] sm:$0xf0]  ;;  %v1334_v42 = vld [vmem:[%s2287_s11 + $0xe0] sm:$0xf]  ;;  %v1226_v46 = vld [vmem:[%s2287_s11 + $0x8] sm:$0xf] }
 0x12d   : > { %825 = vmatpush.bf16.msra.mxu0 %v1219_v63  ;;  %v1449_v43 = vld [vmem:[%s2287_s11 + $0xe8] sm:$0xf0]  ;;  %v1239_v44 = vor.u32 %v1425_v41, %v1238_v40  ;;  %v1422_v47 = vld [vmem:[%s2287_s11 + $0x10] sm:$0xf0]  ;;  %v1322_v48 = vld [vmem:[%s2287_s11 + $0xc8] sm:$0xf] }
 0x12e   : > { %838 = vmatpush.bf16.msra.mxu1 %v1315_v3  ;;  %851 = vmatpush.bf16.msra.mxu2 %v1223_v4  ;;  %v1335_v45 = vor.u32 %v1449_v43, %v1334_v42  ;;  %v1446_v49 = vld [vmem:[%s2287_s11 + $0xd0] sm:$0xf0]  ;;  %v1227_v50 = vor.u32 %v1422_v47, %v1226_v46  ;;  %s2628_s16 = sld [smem:[#allocation28_spill]]  ;;  %v898_v4 = vlaneseq  ;;  %v897_v9 = vld [vmem:[#allocation10] sm:$0xff]  ;;  %s2428_s21 = sshll.u32 %s2585_s8, 4  ;;  %s948_s21 = int_to_ptr.vmem [resolvable:$true] %s2428_s21 }
 0x12f   : > { %864 = vmatpush.bf16.msra.mxu3 %v1319_v5  ;;  %v1323_v51 = vor.u32 %v1446_v49, %v1322_v48  ;;  %s2629_s27 = sld [smem:[#allocation27_spill]]  ;;  %s2637_s3 = scalar_lea.vmem [#allocation12], %s2304_s18 }
 0x130   : > { %826 = vmatmul.bf16.vlgmr.msra.gmra.mxu0 %v2378_v7  ;;  %v899_v5 = vand.u32 127, %v898_v4  ;;  %s2630_s5 = sld [smem:[#allocation41_spill]] }
 0x131   : > { %870 = vmatpush.bf16.msrb.mxu0 %v1311_v6  ;;  %839 = vmatmul.bf16.vlgmr.msra.gmra.mxu1 %v2382_v11  ;;  %v2033_v6 = vmov 1.0   ;;  %s2631_s11 = sld [smem:[#allocation24_spill]] }
 0x132   : > { %883 = vmatpush.bf16.msrb.mxu1 %v1407_v8  ;;  %852 = vmatmul.bf16.vlgmr.msra.gmra.mxu2 %v2378_v7  ;;  %vm900_vm4 = vcmp.lt.s32.totalorder %v899_v5, 64  ;;  %v896_v8 = vld [vmem:[#allocation9] sm:$0xff] }
 0x133   : > { %865 = vmatmul.bf16.vlgmr.msra.gmra.mxu3 %v2382_v11 }
 0x134   : > { %s1411_s30 = sshll.u32 %s2628_s16, 1 }
 0x135   : > { %871 = vmatpush.bf16.msrb.mxu0 %v1299_v14  ;;  %s943_s24 = sadd.s32 %s2629_s27, %s1411_s30  ;;  %s2632_s27 = sld [smem:[#allocation42_spill]] }
 0x136   : > { %884 = vmatpush.bf16.msrb.mxu1 %v1395_v15  ;;  %s2420_s7 = sshll.u32 %s943_s24, 2 }
 0x137   : > { %s945_s25 = scalar_lea.hbm %s2630_s5, %s2420_s7 }
 0x138   : > { %s2430_s17 = sshll.u32 %s945_s25, 4  ;;  %s2444_s25 = sshll.u32 %s2586_s22, 4  ;;  %s950_s17 = int_to_ptr.hbm [resolvable:$true] %s2430_s17  ;;  %s965_s25 = int_to_ptr.vmem [resolvable:$true] %s2444_s25 }
 0x139   : > { %872 = vmatpush.bf16.msrb.mxu0 %v1287_v20 }
 0x13a   : > { %885 = vmatpush.bf16.msrb.mxu1 %v1383_v21 }
 0x13b   : > { %s2633_s23 = smov %s2632_s27  ;;  %s962_s30 = scalar_lea.hbm %s2632_s27, %s2420_s7 }
 0x13c   : > { %s2446_s2 = sshll.u32 %s962_s30, 4  ;;  %s1816_s27 = sshra.s32 %s950_s17, 4  ;;  %s1817_s27 = int_to_ptr.hbm [resolvable:$true] %s1816_s27  ;;  %s967_s2 = int_to_ptr.hbm [resolvable:$true] %s2446_s2 }
 0x13d   : > { %873 = vmatpush.bf16.msrb.mxu0 %v1275_v26  ;;  %s1818_s4 = scalar_lea.hbm %s1817_s27, 4  ;;  %p1823_p13 = scmp.lt.s32.totalorder %s1817_s27, %s2630_s5 }
 0x13e   : > { %886 = vmatpush.bf16.msrb.mxu1 %v1371_v27  ;;  %p1819_p0 = scmp.ne.s32.totalorder %s1817_s27, %s1818_s4 }
 0x140   : > { %p1820_p10 = pnand %p1819_p0, %p2159_p6 }
 0x141   : > { %874 = vmatpush.bf16.msrb.mxu0 %v1263_v32 }
 0x142   : > { %887 = vmatpush.bf16.msrb.mxu1 %v1359_v33  ;;  %p1821_p11 = pneg %p1820_p10 }
 0x145   : > { %875 = vmatpush.bf16.msrb.mxu0 %v1251_v38 }
 0x146   : > { %888 = vmatpush.bf16.msrb.mxu1 %v1347_v39 }
 0x149   : > { %876 = vmatpush.bf16.msrb.mxu0 %v1239_v44 }
 0x14a   : > { %889 = vmatpush.bf16.msrb.mxu1 %v1335_v45 }
 0x14d   : > { %877 = vmatpush.bf16.msrb.mxu0 %v1227_v50 }
 0x14e   : > { %890 = vmatpush.bf16.msrb.mxu1 %v1323_v51 }
 0x150   : > { %878 = vmatmul.bf16.vlgmr.msrb.gmra.mxu0 %v2378_v7  ;;  %v901_v7 = vsel %vm900_vm4, -1.0, %v2033_v6 }
 0x151   : > { %891 = vmatmul.bf16.vlgmr.msrb.gmra.mxu1 %v2382_v11 }
 0x1ad   : > { %v827_v52 = vpop.f32.mrf.mxu0 }
 0x1ae   : > { %v840_v53 = vpop.f32.mrf.mxu1 }
 0x1af   : > { %v841_v54 = vadd.f32 %v840_v53, %v827_v52 }
 0x1b1   : > { %903 = vrot.lane.b32.xlu0 %v841_v54, %s2032_s19  ;;  %v902_v12 = vmul.f32 %v896_v8, %v841_v54 }
 0x1b5   : > { %v853_v55 = vpop.f32.mrf.mxu2  ;;  %v829_v57 = vpop.f32.mrf.mxu0 }
 0x1b6   : > { %v866_v56 = vpop.f32.mrf.mxu3  ;;  %v842_v59 = vpop.f32.mrf.mxu1 }
 0x1b7   : > { %v867_v58 = vadd.f32 %v866_v56, %v853_v55 }
 0x1b9   : > { %910 = vrot.lane.b32.xlu0 %v867_v58, %s2032_s19  ;;  %v909_v19 = vmul.f32 %v896_v8, %v867_v58  ;;  %s2638_s19 = sand.u32 1, %s2631_s11  }
 0x1ba   : > { %s922_s16 = scalar_lea.sflag [#allocation5], %s2638_s19 }
 0x1bd   : > { %v855_v60 = vpop.f32.mrf.mxu2 }
 0x1be   : > { %v868_v61 = vpop.f32.mrf.mxu3 }
 0x1cd   : > { %v879_v62 = vpop.f32.mrf.mxu0 }
 0x1ce   : > { %v892_v63 = vpop.f32.mrf.mxu1 }
 0x1cf   : > { %v893_v0 = vadd.f32 %v892_v63, %v879_v62 }
 0x1d1   : > { %v919_v1 = vpack.c.bf16 %v893_v0, %v893_v0 }
 0x1d3   : > { %920 = vst [vmem:[%s2583_s28] sm:$0xf] %v919_v1  ;;  %s2635_s28 = sld [smem:[#allocation43_spill]] }
 0x1d5   : > { %v881_v2 = vpop.f32.mrf.mxu0 }
 0x1d6   : > { %v894_v3 = vpop.f32.mrf.mxu1 }
 0x1d9   : > { %s2636_s1 = smov %s2635_s28  ;;  %s979_s8 = scalar_lea.hbm %s2635_s28, %s2420_s7 }
 0x1da   : > { %s1822_s7 = scalar_lea.hbm %s2630_s5, 16 }
 0x1db   : > { %p1824_p5 = scmp.lt.s32.totalorder %s1822_s7, %s1818_s4 }
 0x1dd   : > { %p1825_p9 = por %p1824_p5, %p1823_p13 }
 0x1df   : > { %p1826_p1 = pnand %p1825_p9, %p1821_p11 }
 0x223   : > { %v904_v10 = vpop.permute.xlu0 %903 }
 0x224   : > { %v905_v11 = vmul.f32 %v904_v10, %v901_v7 }
 0x226   : > { %v906_v13 = vmul.f32 %v905_v11, %v897_v9 }
 0x228   : > { %v907_v14 = vadd.f32 %v906_v13, %v902_v12 }
 0x22a   : > { %v908_v15 = vmul.f32 0.088388346, %v907_v14 }
 0x22b   : > { %v911_v16 = vpop.permute.xlu0 %910 }
 0x22c   : > { %v912_v17 = vmul.f32 %v911_v16, %v901_v7  ;;  %v915_v18 = vpack.c.bf16 %v908_v15, %v908_v15 }
 0x22e   : > { %v913_v20 = vmul.f32 %v912_v17, %v897_v9  ;;  %916 = vst [vmem:[%s2637_s3] sm:$0xf] %v915_v18 }
 0x22f   : > { %1829 = shalt.err (!%p1826_p1)
}
 0x230   : > { %1487 = dma.vmem_to_hbm [thread:$0]  (%p2159_p6), %s948_s21, 64, %s950_s17, %s922_s16   ;;  %v914_v21 = vadd.f32 %v913_v20, %v909_v19 }
 0x231   : > { %s2639_s3 = scalar_lea.vmem [#allocation15], %s2304_s18  ;;  %s2466_s22 = sshll.u32 %s979_s8, 4  ;;  %s984_s22 = int_to_ptr.hbm [resolvable:$true] %s2466_s22 }
 0x232   : > { %s2464_s11 = sshll.u32 %s2639_s3, 4  ;;  %v917_v22 = vpack.c.bf16 %v914_v21, %v914_v21  ;;  %s2640_s4 = scalar_lea.vmem [#allocation13], %s2304_s18  ;;  %s982_s11 = int_to_ptr.vmem [resolvable:$true] %s2464_s11 }
 0x233   : > { %s2641_s30 = sand.u32 1, %s2143_s15   ;;  %s1844_s27 = sshra.s32 %s967_s2, 4  ;;  %s1845_s27 = int_to_ptr.hbm [resolvable:$true] %s1844_s27 }
 0x234   : > { %918 = vst [vmem:[%s2640_s4] sm:$0xf] %v917_v22  ;;  %s927_s19 = scalar_lea.sflag [#allocation14], %s2641_s30  ;;  %s1846_s21 = scalar_lea.hbm %s1845_s27, 4 }
 0x235   : > { %p1847_p2 = scmp.ne.s32.totalorder %s1845_s27, %s1846_s21  ;;  %s1850_s16 = scalar_lea.hbm %s2633_s23, 16 }
 0x236   : > { %p1851_p3 = scmp.lt.s32.totalorder %s1845_s27, %s2633_s23  ;;  %p1852_p12 = scmp.lt.s32.totalorder %s1850_s16, %s1846_s21 }
 0x237   : > { %p1848_p7 = pnand %p1847_p2, %p2159_p6 }
 0x238   : > { %p1853_p4 = por %p1852_p12, %p1851_p3 }
 0x239   : > { %p1849_p8 = pneg %p1848_p7 }
 0x23b   : > { %p1854_p0 = pnand %p1853_p4, %p1849_p8 }
 0x23d   : > { %1857 = shalt.err (!%p1854_p0)
}
 0x23e   : > { %1488 = dma.vmem_to_hbm [thread:$0]  (%p2159_p6), %s965_s25, 64, %s967_s2, %s927_s19  }
 0x23f   : > { %s1872_s15 = sshra.s32 %s984_s22, 4  ;;  %s1878_s3 = scalar_lea.hbm %s2636_s1, 16  ;;  %s1873_s15 = int_to_ptr.hbm [resolvable:$true] %s1872_s15 }
 0x240   : > { %s1874_s18 = scalar_lea.hbm %s1873_s15, 4  ;;  %p1879_p5 = scmp.lt.s32.totalorder %s1873_s15, %s2636_s1 }
 0x241   : > { %p1875_p10 = scmp.ne.s32.totalorder %s1873_s15, %s1874_s18  ;;  %p1880_p9 = scmp.lt.s32.totalorder %s1878_s3, %s1874_s18 }
 0x243   : > { %p1876_p11 = pnand %p1875_p10, %p2159_p6  ;;  %p1881_p1 = por %p1880_p9, %p1879_p5 }
 0x245   : > { %p1877_p13 = pneg %p1876_p11 }
 0x247   : > { %p1882_p2 = pnand %p1881_p1, %p1877_p13 }
 0x249   : > { %1885 = shalt.err (!%p1882_p2)
}
 0x24a   : > { %1489 = dma.vmem_to_hbm [thread:$0]  (%p2159_p6), %s982_s11, 64, %s984_s22, %s927_s19  }
 0x24b PF: > { %s2642_s2 = sld [smem:[#allocation23_spill]]  ;;  %p1527_p7 = scmp.ge.s32.totalorder %s2024_s14, 2 }
 0x24c   : > { %s2643_s25 = sld [smem:[#allocation31_spill]] }
 0x251   : > { %s995_s27 = sand.u32 1, %s2642_s2  }
 0x252   : > { %p2644_p8 = scmp.ne.s32.totalorder %s2643_s25, 0  ;;  %s996_s21 = scalar_lea.sflag [#allocation5], %s995_s27 }
 0x254   : > { %p1511_p3 = pnand %p1527_p7, %p2644_p8 }
 0x256   : > { %p1512_p12 = pneg %p1511_p3 }
 0x258   : > { %1963 = dma.done.wait (%p1512_p12), %s996_s21, 64  }
 0x259   : > { %1965 = vsyncadd (%p1512_p12), %s996_s21, 4294967232  ;;  %s2645_s17 = sadd.s32 4294967294, %s2024_s14  }
 0x25a   : > { %s1005_s24 = sand.u32 1, %s2645_s17  }
 0x25b   : > { %s1006_s8 = scalar_lea.sflag [#allocation14], %s1005_s24 }
 0x25c   : > { %1967 = dma.done.wait (%p1512_p12), %s1006_s8, 128  }
 0x25d   : > { %1969 = vsyncadd (%p1512_p12), %s1006_s8, 4294967168  ;;  %s29_s14 = sadd.s32 1, %s2024_s14   ;;  %s2647_s24 = sld [smem:[#allocation24_spill]] }
 0x25e   : > { %p2509_p6 = scmp.ge.s32.totalorder %s29_s14, 6   ;;  %s2648_s27 = sld [smem:[#allocation25_spill]] }
 0x25f   : > { %s2649_s22 = sld [smem:[#allocation35_spill]]  ;;  %s2654_s25 = smov %s1980_s26 }
 0x260   : > { %s2650_s30 = sld [smem:[#allocation26_spill]]  ;;  %s2655_s26 = smov %s2237_s10 }
 0x261   : > { %s2651_s19 = sld [smem:[#allocation32_spill]]  ;;  %s2656_s28 = smov %s1992_s29 }
 0x262   : > { %s2652_s16 = sld [smem:[#allocation34_spill]]  ;;  %s2658_s8 = smov %s2004_s9 }
 0x263   : > { %s2659_s9 = smov %s2231_s6  ;;  %s2660_s10 = smov %s2016_s12 }
 0x264   : > { %s2661_s11 = smov %s2020_s13  ;;  %28 = sbr.rel (!%p2509_p6) target bundleno = 23 (0x17), region = 146 }
 0x265   : > { %s2657_s29 = smov %s2649_s22 }
 0x267   : > { %s2662_s12 = smov %s2651_s19 }
 0x268   : > { %s2663_s13 = smov %s2652_s16 }
 0x269   :  { %1022 = vsyncpa [#allocation4], 1 }
 0x26a   :  { %1024 = vsyncpa [#allocation4 + $0x1], 1 }
 0x26b   :  { %1025 = vsyncpa [#allocation7], 1 }
 0x26c   :  { %1026 = vsyncpa [#allocation11], 1 }
 0x26d   :  { %1027 = vsyncpa [#allocation5], 1 }
 0x26e   :  { %1029 = vsyncpa [#allocation5 + $0x1], 1 }
 0x26f   :  { %1030 = vsyncpa [#allocation14], 1 }
 0x270   :  { %1032 = vsyncpa [#allocation14 + $0x1], 1 }

</bundles_post_ra>
